<compile_context>
chip_gen: v5e
topology: v5e:2x2
jax: 0.10.0
libtpu: 0.0.40
codegen_flags: <defaults>
</compile_context>

<pallas_src>
import jax
import jax.numpy as jnp
from jax.experimental import pallas as pl
from jax.experimental.pallas import tpu as pltpu

EMBEDDING_SIZE = 52
HIDDEN = 32
BN_EPS = 1e-5
LEAKY_SLOPE = 0.01

_LANE = 128
_MAX_TILE_B = 512  # batch columns per grid tile (~0.1 MiB x-tile per step)


def _leaky_relu(x):
    return jnp.where(x > 0, x, LEAKY_SLOPE * x)


def _round_up(n, m):
    return ((n + m - 1) // m) * m


def prepare_params(params):
    """One-time conversion of PyTorch-layout params to kernel layout.

    Call once and reuse: avoids per-forward transposes/reshapes in the
    wrapper.  b1 / b2 are intentionally omitted (exactly cancelled by the
    mean subtraction of the following training-mode BatchNorm).
    """
    return dict(
        w1=params["w1"],                 # [32, 52]      (out, in) -- used as-is
        w2=params["w2"],                 # [32, 32]
        w3=params["w3"],                 # [out_dim, 32]
        b3=params["b3"].reshape(-1, 1),  # [out_dim, 1]
        g1=params["g1"].reshape(-1, 1),  # [32, 1]
        be1=params["be1"].reshape(-1, 1),
        g2=params["g2"].reshape(-1, 1),
        be2=params["be2"].reshape(-1, 1),
    )


def uclassifier_forward(x, prep, *, max_tile_b=_MAX_TILE_B):
    """x: [B, 52] float32.  prep: output of prepare_params()."""
    B = x.shape[0]
    assert B >= 2, "BatchNorm1d in training mode requires batch size >= 2"
    out_dim = prep["w3"].shape[0]

    tile_b = min(max_tile_b, _round_up(B, _LANE))
    num_tiles = pl.cdiv(B, tile_b)
    b_pad = num_tiles * tile_b
    inv_b = 1.0 / float(B)  # true batch size for BN statistics (biased var)

    # Batch-on-lanes layout: [F, B_pad]; padded batch columns are zero.
    x_t = jnp.pad(jnp.transpose(x), ((0, 0), (0, b_pad - B)))

    def kernel(x_ref, w1_ref, w2_ref, w3_ref, b3_ref,
               g1_ref, be1_ref, g2_ref, be2_ref,
               out_ref,
               sum1_ref, sq1_ref, sum2_ref, sq2_ref,
               sc1_ref, sh1_ref, sc2_ref, sh2_ref):
        phase = pl.program_id(0)
        t = pl.program_id(1)

        # [32, tile_b]; recomputed in every phase (MXU is nearly idle here).
        h1 = jnp.dot(w1_ref[...], x_ref[...], preferred_element_type=jnp.float32)

        # ---------------- phase 0: accumulate layer-1 BN statistics ---------
        @pl.when(phase == 0)
        def _phase0():
            @pl.when(t == 0)
            def _init():
                sum1_ref[...] = jnp.zeros_like(sum1_ref)
                sq1_ref[...] = jnp.zeros_like(sq1_ref)
                sum2_ref[...] = jnp.zeros_like(sum2_ref)
                sq2_ref[...] = jnp.zeros_like(sq2_ref)

            # Padded batch columns of x are zero and there is no bias, so the
            # padded columns of h1 are exactly zero: no masking needed here.
            sum1_ref[...] = sum1_ref[...] + jnp.sum(h1, axis=1, keepdims=True)
            sq1_ref[...] = sq1_ref[...] + jnp.sum(h1 * h1, axis=1, keepdims=True)

        # ---------------- phases 1 & 2 --------------------------------------
        @pl.when(phase > 0)
        def _phase12():
            @pl.when(jnp.logical_and(phase == 1, t == 0))
            def _finalize_bn1():
                mean = sum1_ref[...] * inv_b
                var = jnp.maximum(sq1_ref[...] * inv_b - mean * mean, 0.0)
                sc = jax.lax.rsqrt(var + BN_EPS) * g1_ref[...]
                sc1_ref[...] = sc
                sh1_ref[...] = be1_ref[...] - mean * sc

            a1 = _leaky_relu(h1 * sc1_ref[...] + sh1_ref[...])
            h2 = jnp.dot(w2_ref[...], a1, preferred_element_type=jnp.float32)

            @pl.when(phase == 1)
            def _phase1():
                # a1/h2 are NOT zero in padded columns -> mask them out of the
                # layer-2 statistics.
                col = (jax.lax.broadcasted_iota(jnp.int32, (1, tile_b), 1)
                       + t * tile_b)
                valid = (col < B).astype(jnp.float32)
                h2m = h2 * valid
                sum2_ref[...] = sum2_ref[...] + jnp.sum(h2m, axis=1,
                                                        keepdims=True)
                sq2_ref[...] = sq2_ref[...] + jnp.sum(h2m * h2m, axis=1,
                                                      keepdims=True)

            @pl.when(phase == 2)
            def _phase2():
                @pl.when(t == 0)
                def _finalize_bn2():
                    mean2 = sum2_ref[...] * inv_b
                    var2 = jnp.maximum(sq2_ref[...] * inv_b - mean2 * mean2, 0.0)
                    sc2 = jax.lax.rsqrt(var2 + BN_EPS) * g2_ref[...]
                    sc2_ref[...] = sc2
                    sh2_ref[...] = be2_ref[...] - mean2 * sc2

                a2 = _leaky_relu(h2 * sc2_ref[...] + sh2_ref[...])
                out = (jnp.dot(w3_ref[...], a2,
                               preferred_element_type=jnp.float32)
                       + b3_ref[...])
                out_ref[...] = out.astype(out_ref.dtype)  # lane-dense store

    def _const(shape):
        return pl.BlockSpec(shape, lambda p, t: (0, 0))

    chan_scratch = pltpu.VMEM((HIDDEN, 1), jnp.float32)

    out_t = pl.pallas_call(
        kernel,
        out_shape=jax.ShapeDtypeStruct((out_dim, b_pad), jnp.float32),
        grid=(3, num_tiles),
        in_specs=[
            pl.BlockSpec((EMBEDDING_SIZE, tile_b), lambda p, t: (0, t)),  # x_t
            _const((HIDDEN, EMBEDDING_SIZE)),   # w1
            _const((HIDDEN, HIDDEN)),           # w2
            _const((out_dim, HIDDEN)),          # w3
            _const((out_dim, 1)),               # b3
            _const((HIDDEN, 1)),                # gamma1
            _const((HIDDEN, 1)),                # beta1
            _const((HIDDEN, 1)),                # gamma2
            _const((HIDDEN, 1)),                # beta2
        ],
        out_specs=pl.BlockSpec((out_dim, tile_b), lambda p, t: (0, t)),
        scratch_shapes=[
            chan_scratch,  # sum   (layer 1)
            chan_scratch,  # sumsq (layer 1)
            chan_scratch,  # sum   (layer 2)
            chan_scratch,  # sumsq (layer 2)
            chan_scratch,  # folded BN1 scale
            chan_scratch,  # folded BN1 shift
            chan_scratch,  # folded BN2 scale
            chan_scratch,  # folded BN2 shift
        ],
        compiler_params=pltpu.CompilerParams(
            # Both axes must run sequentially: BN batch statistics of a phase
            # must be complete before the next phase consumes them.
            dimension_semantics=("arbitrary", "arbitrary"),
            # Per-step VMEM footprint is < 1 MiB; 32 MiB is safe on
            # v5e / v6e / v7x alike.
            vmem_limit_bytes=32 * 1024 * 1024,
        ),
    )(x_t, prep["w1"], prep["w2"], prep["w3"], prep["b3"],
      prep["g1"], prep["be1"], prep["g2"], prep["be2"])

    # Back to PyTorch layout [B, output_dim]; drop batch padding.
    return jnp.transpose(out_t[:, :B])


def init_params(key, output_dim):
    ks = jax.random.split(key, 6)
    scale1 = 1.0 / jnp.sqrt(EMBEDDING_SIZE)
    scale2 = 1.0 / jnp.sqrt(HIDDEN)
    params = {
        # Linear weights/biases in PyTorch layout: weight [out, in], bias [out]
        "w1": jax.random.uniform(ks[0], (HIDDEN, EMBEDDING_SIZE), jnp.float32,
                                 -scale1, scale1),
        "b1": jax.random.uniform(ks[1], (HIDDEN,), jnp.float32, -scale1, scale1),
        "w2": jax.random.uniform(ks[2], (HIDDEN, HIDDEN), jnp.float32,
                                 -scale2, scale2),
        "b2": jax.random.uniform(ks[3], (HIDDEN,), jnp.float32, -scale2, scale2),
        "w3": jax.random.uniform(ks[4], (output_dim, HIDDEN), jnp.float32,
                                 -scale2, scale2),
        "b3": jax.random.uniform(ks[5], (output_dim,), jnp.float32,
                                 -scale2, scale2),
        # BatchNorm affine params: PyTorch defaults gamma=1, beta=0
        "g1": jnp.ones((HIDDEN,), jnp.float32),
        "be1": jnp.zeros((HIDDEN,), jnp.float32),
        "g2": jnp.ones((HIDDEN,), jnp.float32),
        "be2": jnp.zeros((HIDDEN,), jnp.float32),
    }
    return params


def reference_forward(x, params):
    """Pure-JAX reference with PyTorch (training-mode BN) semantics."""
    def bn(h, g, b):
        mean = jnp.mean(h, axis=0, keepdims=True)
        var = jnp.mean((h - mean) ** 2, axis=0, keepdims=True)
        return (h - mean) * jax.lax.rsqrt(var + BN_EPS) * g + b

    h1 = x @ params["w1"].T + params["b1"]
    a1 = _leaky_relu(bn(h1, params["g1"], params["be1"]))
    h2 = a1 @ params["w2"].T + params["b2"]
    a2 = _leaky_relu(bn(h2, params["g2"], params["be2"]))
    return a2 @ params["w3"].T + params["b3"]


if __name__ == "__main__":
    key = jax.random.PRNGKey(0)
    k_x, k_p = jax.random.split(key)

    batch = 8
    output_dim = 4

    x = jax.random.normal(k_x, (batch, EMBEDDING_SIZE), jnp.float32)
    params = init_params(k_p, output_dim)
    prep = prepare_params(params)   # one-time layout conversion

    out = uclassifier_forward(x, prep)
    out = jax.block_until_ready(out)

    ref = reference_forward(x, params)
    assert out.shape == (batch, output_dim)
    assert jnp.allclose(out, ref, atol=1e-4, rtol=1e-4), \
        float(jnp.max(jnp.abs(out - ref)))

    print("KERNEL_OK")
</pallas_src>

<mosaic_0001>
module attributes {stable_mosaic.version = 11 : i64} {
  func.func @kernel(%arg0: i32, %arg1: i32, %arg2: memref<52x128xf32, #tpu.memory_space<vmem>>, %arg3: memref<32x52xf32, #tpu.memory_space<vmem>>, %arg4: memref<32x32xf32, #tpu.memory_space<vmem>>, %arg5: memref<4x32xf32, #tpu.memory_space<vmem>>, %arg6: memref<4x1xf32, #tpu.memory_space<vmem>>, %arg7: memref<32x1xf32, #tpu.memory_space<vmem>>, %arg8: memref<32x1xf32, #tpu.memory_space<vmem>>, %arg9: memref<32x1xf32, #tpu.memory_space<vmem>>, %arg10: memref<32x1xf32, #tpu.memory_space<vmem>>, %arg11: memref<4x128xf32, #tpu.memory_space<vmem>>, %arg12: memref<32x1xf32, #tpu.memory_space<vmem>>, %arg13: memref<32x1xf32, #tpu.memory_space<vmem>>, %arg14: memref<32x1xf32, #tpu.memory_space<vmem>>, %arg15: memref<32x1xf32, #tpu.memory_space<vmem>>, %arg16: memref<32x1xf32, #tpu.memory_space<vmem>>, %arg17: memref<32x1xf32, #tpu.memory_space<vmem>>, %arg18: memref<32x1xf32, #tpu.memory_space<vmem>>, %arg19: memref<32x1xf32, #tpu.memory_space<vmem>>) attributes {dimension_semantics = [#tpu.dimension_semantics<arbitrary>, #tpu.dimension_semantics<arbitrary>], iteration_bounds = array<i64: 3, 1>, scalar_prefetch = 0 : i64, scratch_operands = 8 : i64, tpu.core_type = #tpu.core_type<tc>, window_params = [{transform_indices = @transform_0, window_bounds = array<i64: 52, 128>}, {pipeline_mode = #tpu.pipeline_mode<synchronous>, transform_indices = @transform_1, window_bounds = array<i64: 32, 52>}, {pipeline_mode = #tpu.pipeline_mode<synchronous>, transform_indices = @transform_2, window_bounds = array<i64: 32, 32>}, {pipeline_mode = #tpu.pipeline_mode<synchronous>, transform_indices = @transform_3, window_bounds = array<i64: 4, 32>}, {pipeline_mode = #tpu.pipeline_mode<synchronous>, transform_indices = @transform_4, window_bounds = array<i64: 4, 1>}, {pipeline_mode = #tpu.pipeline_mode<synchronous>, transform_indices = @transform_5, window_bounds = array<i64: 32, 1>}, {pipeline_mode = #tpu.pipeline_mode<synchronous>, transform_indices = @transform_6, window_bounds = array<i64: 32, 1>}, {pipeline_mode = #tpu.pipeline_mode<synchronous>, transform_indices = @transform_7, window_bounds = array<i64: 32, 1>}, {pipeline_mode = #tpu.pipeline_mode<synchronous>, transform_indices = @transform_8, window_bounds = array<i64: 32, 1>}, {transform_indices = @transform_9, window_bounds = array<i64: 4, 128>}]} {
    %c0 = arith.constant 0 : index
    %c0_0 = arith.constant 0 : index
    %0 = vector.load %arg3[%c0, %c0_0] : memref<32x52xf32, #tpu.memory_space<vmem>>, vector<32x52xf32>
    %c0_1 = arith.constant 0 : index
    %c0_2 = arith.constant 0 : index
    %1 = vector.load %arg2[%c0_1, %c0_2] : memref<52x128xf32, #tpu.memory_space<vmem>>, vector<52x128xf32>
    %cst = arith.constant dense<0.000000e+00> : vector<32x128xf32>
    %2 = tpu.matmul %0, %1, %cst {dimension_numbers = #tpu.dot_dimension_numbers<[1], [0], [0], [1], [0, 0, 1, 1], [], []>} : vector<32x52xf32>, vector<52x128xf32>, vector<32x128xf32> -> vector<32x128xf32>
    %c0_i32 = arith.constant 0 : i32
    %3 = arith.cmpi eq, %arg0, %c0_i32 : i32
    %4 = arith.extui %3 : i1 to i32
    %c0_i32_3 = arith.constant 0 : i32
    %5 = arith.cmpi ne, %4, %c0_i32_3 : i32
    scf.if %5 {
      %c0_i32_6 = arith.constant 0 : i32
      %9 = arith.cmpi eq, %arg1, %c0_i32_6 : i32
      %10 = arith.extui %9 : i1 to i32
      %c0_i32_7 = arith.constant 0 : i32
      %11 = arith.cmpi ne, %10, %c0_i32_7 : i32
      scf.if %11 {
        %cst_18 = arith.constant 0.000000e+00 : f32
        %23 = vector.broadcast %cst_18 : f32 to vector<32x1xf32>
        %c0_19 = arith.constant 0 : index
        %c0_20 = arith.constant 0 : index
        %24 = vector.load %arg12[%c0_19, %c0_20] : memref<32x1xf32, #tpu.memory_space<vmem>>, vector<32x1xf32>
        tpu.vector_store %arg12[%c0_19, %c0_20], %23 {strides = array<i32>} : memref<32x1xf32, #tpu.memory_space<vmem>>, vector<32x1xf32>,
        %cst_21 = arith.constant 0.000000e+00 : f32
        %25 = vector.broadcast %cst_21 : f32 to vector<32x1xf32>
        %c0_22 = arith.constant 0 : index
        %c0_23 = arith.constant 0 : index
        %26 = vector.load %arg13[%c0_22, %c0_23] : memref<32x1xf32, #tpu.memory_space<vmem>>, vector<32x1xf32>
        tpu.vector_store %arg13[%c0_22, %c0_23], %25 {strides = array<i32>} : memref<32x1xf32, #tpu.memory_space<vmem>>, vector<32x1xf32>,
        %cst_24 = arith.constant 0.000000e+00 : f32
        %27 = vector.broadcast %cst_24 : f32 to vector<32x1xf32>
        %c0_25 = arith.constant 0 : index
        %c0_26 = arith.constant 0 : index
        %28 = vector.load %arg14[%c0_25, %c0_26] : memref<32x1xf32, #tpu.memory_space<vmem>>, vector<32x1xf32>
        tpu.vector_store %arg14[%c0_25, %c0_26], %27 {strides = array<i32>} : memref<32x1xf32, #tpu.memory_space<vmem>>, vector<32x1xf32>,
        %cst_27 = arith.constant 0.000000e+00 : f32
        %29 = vector.broadcast %cst_27 : f32 to vector<32x1xf32>
        %c0_28 = arith.constant 0 : index
        %c0_29 = arith.constant 0 : index
        %30 = vector.load %arg15[%c0_28, %c0_29] : memref<32x1xf32, #tpu.memory_space<vmem>>, vector<32x1xf32>
        tpu.vector_store %arg15[%c0_28, %c0_29], %29 {strides = array<i32>} : memref<32x1xf32, #tpu.memory_space<vmem>>, vector<32x1xf32>,
      } else {
      }
      %c0_8 = arith.constant 0 : index
      %c0_9 = arith.constant 0 : index
      %12 = vector.load %arg12[%c0_8, %c0_9] : memref<32x1xf32, #tpu.memory_space<vmem>>, vector<32x1xf32>
      %cst_10 = arith.constant dense<0.000000e+00> : vector<32xf32>
      %13 = vector.multi_reduction <add>, %2, %cst_10 [1] : vector<32x128xf32> to vector<32xf32>
      %14 = vector.shape_cast %13 : vector<32xf32> to vector<32x1xf32>
      %15 = arith.addf %12, %14 : vector<32x1xf32>
      %c0_11 = arith.constant 0 : index
      %c0_12 = arith.constant 0 : index
      %16 = vector.load %arg12[%c0_11, %c0_12] : memref<32x1xf32, #tpu.memory_space<vmem>>, vector<32x1xf32>
      tpu.vector_store %arg12[%c0_11, %c0_12], %15 {strides = array<i32>} : memref<32x1xf32, #tpu.memory_space<vmem>>, vector<32x1xf32>,
      %c0_13 = arith.constant 0 : index
      %c0_14 = arith.constant 0 : index
      %17 = vector.load %arg13[%c0_13, %c0_14] : memref<32x1xf32, #tpu.memory_space<vmem>>, vector<32x1xf32>
      %18 = arith.mulf %2, %2 : vector<32x128xf32>
      %cst_15 = arith.constant dense<0.000000e+00> : vector<32xf32>
      %19 = vector.multi_reduction <add>, %18, %cst_15 [1] : vector<32x128xf32> to vector<32xf32>
      %20 = vector.shape_cast %19 : vector<32xf32> to vector<32x1xf32>
      %21 = arith.addf %17, %20 : vector<32x1xf32>
      %c0_16 = arith.constant 0 : index
      %c0_17 = arith.constant 0 : index
      %22 = vector.load %arg13[%c0_16, %c0_17] : memref<32x1xf32, #tpu.memory_space<vmem>>, vector<32x1xf32>
      tpu.vector_store %arg13[%c0_16, %c0_17], %21 {strides = array<i32>} : memref<32x1xf32, #tpu.memory_space<vmem>>, vector<32x1xf32>,
    } else {
    }
    %c0_i32_4 = arith.constant 0 : i32
    %6 = arith.cmpi sgt, %arg0, %c0_i32_4 : i32
    %7 = arith.extui %6 : i1 to i32
    %c0_i32_5 = arith.constant 0 : i32
    %8 = arith.cmpi ne, %7, %c0_i32_5 : i32
    scf.if %8 {
      %c1_i32 = arith.constant 1 : i32
      %9 = arith.cmpi eq, %arg0, %c1_i32 : i32
      %c0_i32_6 = arith.constant 0 : i32
      %10 = arith.cmpi eq, %arg1, %c0_i32_6 : i32
      %11 = arith.andi %9, %10 : i1
      %12 = arith.extui %11 : i1 to i32
      %c0_i32_7 = arith.constant 0 : i32
      %13 = arith.cmpi ne, %12, %c0_i32_7 : i32
      scf.if %13 {
        %c0_20 = arith.constant 0 : index
        %c0_21 = arith.constant 0 : index
        %33 = vector.load %arg12[%c0_20, %c0_21] : memref<32x1xf32, #tpu.memory_space<vmem>>, vector<32x1xf32>
        %cst_22 = arith.constant 1.250000e-01 : f32
        %34 = vector.broadcast %cst_22 : f32 to vector<32x1xf32>
        %35 = arith.mulf %33, %34 : vector<32x1xf32>
        %c0_23 = arith.constant 0 : index
        %c0_24 = arith.constant 0 : index
        %36 = vector.load %arg13[%c0_23, %c0_24] : memref<32x1xf32, #tpu.memory_space<vmem>>, vector<32x1xf32>
        %cst_25 = arith.constant 1.250000e-01 : f32
        %37 = vector.broadcast %cst_25 : f32 to vector<32x1xf32>
        %38 = arith.mulf %36, %37 : vector<32x1xf32>
        %39 = arith.mulf %35, %35 : vector<32x1xf32>
        %40 = arith.subf %38, %39 : vector<32x1xf32>
        %cst_26 = arith.constant 0.000000e+00 : f32
        %41 = vector.broadcast %cst_26 : f32 to vector<32x1xf32>
        %42 = arith.maximumf %40, %41 : vector<32x1xf32>
        %cst_27 = arith.constant 9.99999974E-6 : f32
        %43 = vector.broadcast %cst_27 : f32 to vector<32x1xf32>
        %44 = arith.addf %42, %43 : vector<32x1xf32>
        %45 = math.rsqrt %44 : vector<32x1xf32>
        %c0_28 = arith.constant 0 : index
        %c0_29 = arith.constant 0 : index
        %46 = vector.load %arg7[%c0_28, %c0_29] : memref<32x1xf32, #tpu.memory_space<vmem>>, vector<32x1xf32>
        %47 = arith.mulf %45, %46 : vector<32x1xf32>
        %c0_30 = arith.constant 0 : index
        %c0_31 = arith.constant 0 : index
        %48 = vector.load %arg16[%c0_30, %c0_31] : memref<32x1xf32, #tpu.memory_space<vmem>>, vector<32x1xf32>
        tpu.vector_store %arg16[%c0_30, %c0_31], %47 {strides = array<i32>} : memref<32x1xf32, #tpu.memory_space<vmem>>, vector<32x1xf32>,
        %c0_32 = arith.constant 0 : index
        %c0_33 = arith.constant 0 : index
        %49 = vector.load %arg8[%c0_32, %c0_33] : memref<32x1xf32, #tpu.memory_space<vmem>>, vector<32x1xf32>
        %50 = arith.mulf %35, %47 : vector<32x1xf32>
        %51 = arith.subf %49, %50 : vector<32x1xf32>
        %c0_34 = arith.constant 0 : index
        %c0_35 = arith.constant 0 : index
        %52 = vector.load %arg17[%c0_34, %c0_35] : memref<32x1xf32, #tpu.memory_space<vmem>>, vector<32x1xf32>
        tpu.vector_store %arg17[%c0_34, %c0_35], %51 {strides = array<i32>} : memref<32x1xf32, #tpu.memory_space<vmem>>, vector<32x1xf32>,
      } else {
      }
      %c0_8 = arith.constant 0 : index
      %c0_9 = arith.constant 0 : index
      %14 = vector.load %arg16[%c0_8, %c0_9] : memref<32x1xf32, #tpu.memory_space<vmem>>, vector<32x1xf32>
      %15 = vector.broadcast %14 : vector<32x1xf32> to vector<32x128xf32>
      %16 = arith.mulf %2, %15 : vector<32x128xf32>
      %c0_10 = arith.constant 0 : index
      %c0_11 = arith.constant 0 : index
      %17 = vector.load %arg17[%c0_10, %c0_11] : memref<32x1xf32, #tpu.memory_space<vmem>>, vector<32x1xf32>
      %18 = vector.broadcast %17 : vector<32x1xf32> to vector<32x128xf32>
      %19 = arith.addf %16, %18 : vector<32x128xf32>
      %cst_12 = arith.constant 0.000000e+00 : f32
      %20 = vector.broadcast %cst_12 : f32 to vector<32x128xf32>
      %21 = arith.cmpf ogt, %19, %20 : vector<32x128xf32>
      %cst_13 = arith.constant 0.00999999977 : f32
      %22 = vector.broadcast %cst_13 : f32 to vector<32x128xf32>
      %23 = arith.mulf %22, %19 : vector<32x128xf32>
      %24 = arith.select %21, %19, %23 : vector<32x128xi1>, vector<32x128xf32>
      %c0_14 = arith.constant 0 : index
      %c0_15 = arith.constant 0 : index
      %25 = vector.load %arg4[%c0_14, %c0_15] : memref<32x32xf32, #tpu.memory_space<vmem>>, vector<32x32xf32>
      %cst_16 = arith.constant dense<0.000000e+00> : vector<32x128xf32>
      %26 = tpu.matmul %25, %24, %cst_16 {dimension_numbers = #tpu.dot_dimension_numbers<[1], [0], [0], [1], [0, 0, 1, 1], [], []>} : vector<32x32xf32>, vector<32x128xf32>, vector<32x128xf32> -> vector<32x128xf32>
      %c1_i32_17 = arith.constant 1 : i32
      %27 = arith.cmpi eq, %arg0, %c1_i32_17 : i32
      %28 = arith.extui %27 : i1 to i32
      %c0_i32_18 = arith.constant 0 : i32
      %29 = arith.cmpi ne, %28, %c0_i32_18 : i32
      scf.if %29 {
        %33 = tpu.iota {dimensions = array<i32: 1>} : vector<1x128xi32>
        %c128_i32 = arith.constant 128 : i32
        %34 = arith.muli %arg1, %c128_i32 : i32
        %35 = vector.broadcast %34 : i32 to vector<1x128xi32>
        %36 = arith.addi %33, %35 : vector<1x128xi32>
        %c8_i32 = arith.constant 8 : i32
        %37 = vector.broadcast %c8_i32 : i32 to vector<1x128xi32>
        %38 = arith.cmpi slt, %36, %37 : vector<1x128xi32>
        %39 = arith.extui %38 : vector<1x128xi1> to vector<1x128xi32>
        %40 = arith.sitofp %39 : vector<1x128xi32> to vector<1x128xf32>
        %41 = vector.broadcast %40 : vector<1x128xf32> to vector<32x128xf32>
        %42 = arith.mulf %26, %41 : vector<32x128xf32>
        %c0_20 = arith.constant 0 : index
        %c0_21 = arith.constant 0 : index
        %43 = vector.load %arg14[%c0_20, %c0_21] : memref<32x1xf32, #tpu.memory_space<vmem>>, vector<32x1xf32>
        %cst_22 = arith.constant dense<0.000000e+00> : vector<32xf32>
        %44 = vector.multi_reduction <add>, %42, %cst_22 [1] : vector<32x128xf32> to vector<32xf32>
        %45 = vector.shape_cast %44 : vector<32xf32> to vector<32x1xf32>
        %46 = arith.addf %43, %45 : vector<32x1xf32>
        %c0_23 = arith.constant 0 : index
        %c0_24 = arith.constant 0 : index
        %47 = vector.load %arg14[%c0_23, %c0_24] : memref<32x1xf32, #tpu.memory_space<vmem>>, vector<32x1xf32>
        tpu.vector_store %arg14[%c0_23, %c0_24], %46 {strides = array<i32>} : memref<32x1xf32, #tpu.memory_space<vmem>>, vector<32x1xf32>,
        %c0_25 = arith.constant 0 : index
        %c0_26 = arith.constant 0 : index
        %48 = vector.load %arg15[%c0_25, %c0_26] : memref<32x1xf32, #tpu.memory_space<vmem>>, vector<32x1xf32>
        %49 = arith.mulf %42, %42 : vector<32x128xf32>
        %cst_27 = arith.constant dense<0.000000e+00> : vector<32xf32>
        %50 = vector.multi_reduction <add>, %49, %cst_27 [1] : vector<32x128xf32> to vector<32xf32>
        %51 = vector.shape_cast %50 : vector<32xf32> to vector<32x1xf32>
        %52 = arith.addf %48, %51 : vector<32x1xf32>
        %c0_28 = arith.constant 0 : index
        %c0_29 = arith.constant 0 : index
        %53 = vector.load %arg15[%c0_28, %c0_29] : memref<32x1xf32, #tpu.memory_space<vmem>>, vector<32x1xf32>
        tpu.vector_store %arg15[%c0_28, %c0_29], %52 {strides = array<i32>} : memref<32x1xf32, #tpu.memory_space<vmem>>, vector<32x1xf32>,
      } else {
      }
      %c2_i32 = arith.constant 2 : i32
      %30 = arith.cmpi eq, %arg0, %c2_i32 : i32
      %31 = arith.extui %30 : i1 to i32
      %c0_i32_19 = arith.constant 0 : i32
      %32 = arith.cmpi ne, %31, %c0_i32_19 : i32
      scf.if %32 {
        %c0_i32_20 = arith.constant 0 : i32
        %33 = arith.cmpi eq, %arg1, %c0_i32_20 : i32
        %34 = arith.extui %33 : i1 to i32
        %c0_i32_21 = arith.constant 0 : i32
        %35 = arith.cmpi ne, %34, %c0_i32_21 : i32
        scf.if %35 {
          %c0_35 = arith.constant 0 : index
          %c0_36 = arith.constant 0 : index
          %53 = vector.load %arg14[%c0_35, %c0_36] : memref<32x1xf32, #tpu.memory_space<vmem>>, vector<32x1xf32>
          %cst_37 = arith.constant 1.250000e-01 : f32
          %54 = vector.broadcast %cst_37 : f32 to vector<32x1xf32>
          %55 = arith.mulf %53, %54 : vector<32x1xf32>
          %c0_38 = arith.constant 0 : index
          %c0_39 = arith.constant 0 : index
          %56 = vector.load %arg15[%c0_38, %c0_39] : memref<32x1xf32, #tpu.memory_space<vmem>>, vector<32x1xf32>
          %cst_40 = arith.constant 1.250000e-01 : f32
          %57 = vector.broadcast %cst_40 : f32 to vector<32x1xf32>
          %58 = arith.mulf %56, %57 : vector<32x1xf32>
          %59 = arith.mulf %55, %55 : vector<32x1xf32>
          %60 = arith.subf %58, %59 : vector<32x1xf32>
          %cst_41 = arith.constant 0.000000e+00 : f32
          %61 = vector.broadcast %cst_41 : f32 to vector<32x1xf32>
          %62 = arith.maximumf %60, %61 : vector<32x1xf32>
          %cst_42 = arith.constant 9.99999974E-6 : f32
          %63 = vector.broadcast %cst_42 : f32 to vector<32x1xf32>
          %64 = arith.addf %62, %63 : vector<32x1xf32>
          %65 = math.rsqrt %64 : vector<32x1xf32>
          %c0_43 = arith.constant 0 : index
          %c0_44 = arith.constant 0 : index
          %66 = vector.load %arg9[%c0_43, %c0_44] : memref<32x1xf32, #tpu.memory_space<vmem>>, vector<32x1xf32>
          %67 = arith.mulf %65, %66 : vector<32x1xf32>
          %c0_45 = arith.constant 0 : index
          %c0_46 = arith.constant 0 : index
          %68 = vector.load %arg18[%c0_45, %c0_46] : memref<32x1xf32, #tpu.memory_space<vmem>>, vector<32x1xf32>
          tpu.vector_store %arg18[%c0_45, %c0_46], %67 {strides = array<i32>} : memref<32x1xf32, #tpu.memory_space<vmem>>, vector<32x1xf32>,
          %c0_47 = arith.constant 0 : index
          %c0_48 = arith.constant 0 : index
          %69 = vector.load %arg10[%c0_47, %c0_48] : memref<32x1xf32, #tpu.memory_space<vmem>>, vector<32x1xf32>
          %70 = arith.mulf %55, %67 : vector<32x1xf32>
          %71 = arith.subf %69, %70 : vector<32x1xf32>
          %c0_49 = arith.constant 0 : index
          %c0_50 = arith.constant 0 : index
          %72 = vector.load %arg19[%c0_49, %c0_50] : memref<32x1xf32, #tpu.memory_space<vmem>>, vector<32x1xf32>
          tpu.vector_store %arg19[%c0_49, %c0_50], %71 {strides = array<i32>} : memref<32x1xf32, #tpu.memory_space<vmem>>, vector<32x1xf32>,
        } else {
        }
        %c0_22 = arith.constant 0 : index
        %c0_23 = arith.constant 0 : index
        %36 = vector.load %arg18[%c0_22, %c0_23] : memref<32x1xf32, #tpu.memory_space<vmem>>, vector<32x1xf32>
        %37 = vector.broadcast %36 : vector<32x1xf32> to vector<32x128xf32>
        %38 = arith.mulf %26, %37 : vector<32x128xf32>
        %c0_24 = arith.constant 0 : index
        %c0_25 = arith.constant 0 : index
        %39 = vector.load %arg19[%c0_24, %c0_25] : memref<32x1xf32, #tpu.memory_space<vmem>>, vector<32x1xf32>
        %40 = vector.broadcast %39 : vector<32x1xf32> to vector<32x128xf32>
        %41 = arith.addf %38, %40 : vector<32x128xf32>
        %cst_26 = arith.constant 0.000000e+00 : f32
        %42 = vector.broadcast %cst_26 : f32 to vector<32x128xf32>
        %43 = arith.cmpf ogt, %41, %42 : vector<32x128xf32>
        %cst_27 = arith.constant 0.00999999977 : f32
        %44 = vector.broadcast %cst_27 : f32 to vector<32x128xf32>
        %45 = arith.mulf %44, %41 : vector<32x128xf32>
        %46 = arith.select %43, %41, %45 : vector<32x128xi1>, vector<32x128xf32>
        %c0_28 = arith.constant 0 : index
        %c0_29 = arith.constant 0 : index
        %47 = vector.load %arg5[%c0_28, %c0_29] : memref<4x32xf32, #tpu.memory_space<vmem>>, vector<4x32xf32>
        %cst_30 = arith.constant dense<0.000000e+00> : vector<4x128xf32>
        %48 = tpu.matmul %47, %46, %cst_30 {dimension_numbers = #tpu.dot_dimension_numbers<[1], [0], [0], [1], [0, 0, 1, 1], [], []>} : vector<4x32xf32>, vector<32x128xf32>, vector<4x128xf32> -> vector<4x128xf32>
        %c0_31 = arith.constant 0 : index
        %c0_32 = arith.constant 0 : index
        %49 = vector.load %arg6[%c0_31, %c0_32] : memref<4x1xf32, #tpu.memory_space<vmem>>, vector<4x1xf32>
        %50 = vector.broadcast %49 : vector<4x1xf32> to vector<4x128xf32>
        %51 = arith.addf %48, %50 : vector<4x128xf32>
        %c0_33 = arith.constant 0 : index
        %c0_34 = arith.constant 0 : index
        %52 = vector.load %arg11[%c0_33, %c0_34] : memref<4x128xf32, #tpu.memory_space<vmem>>, vector<4x128xf32>
        tpu.vector_store %arg11[%c0_33, %c0_34], %51 {strides = array<i32>} : memref<4x128xf32, #tpu.memory_space<vmem>>, vector<4x128xf32>,
      } else {
      }
    } else {
    }
    return
  }
  func.func @transform_0(%arg0: i32, %arg1: i32) -> (i32, i32) {
    %c0_i32 = arith.constant 0 : i32
    %c0_i32_0 = arith.constant 0 : i32
    return %c0_i32, %arg1 : i32, i32
  }
  func.func @transform_1(%arg0: i32, %arg1: i32) -> (i32, i32) {
    %c0_i32 = arith.constant 0 : i32
    %c0_i32_0 = arith.constant 0 : i32
    %c0_i32_1 = arith.constant 0 : i32
    return %c0_i32, %c0_i32_0 : i32, i32
  }
  func.func @transform_2(%arg0: i32, %arg1: i32) -> (i32, i32) {
    %c0_i32 = arith.constant 0 : i32
    %c0_i32_0 = arith.constant 0 : i32
    %c0_i32_1 = arith.constant 0 : i32
    return %c0_i32, %c0_i32_0 : i32, i32
  }
  func.func @transform_3(%arg0: i32, %arg1: i32) -> (i32, i32) {
    %c0_i32 = arith.constant 0 : i32
    %c0_i32_0 = arith.constant 0 : i32
    %c0_i32_1 = arith.constant 0 : i32
    return %c0_i32, %c0_i32_0 : i32, i32
  }
  func.func @transform_4(%arg0: i32, %arg1: i32) -> (i32, i32) {
    %c0_i32 = arith.constant 0 : i32
    %c0_i32_0 = arith.constant 0 : i32
    %c0_i32_1 = arith.constant 0 : i32
    return %c0_i32, %c0_i32_0 : i32, i32
  }
  func.func @transform_5(%arg0: i32, %arg1: i32) -> (i32, i32) {
    %c0_i32 = arith.constant 0 : i32
    %c0_i32_0 = arith.constant 0 : i32
    %c0_i32_1 = arith.constant 0 : i32
    return %c0_i32, %c0_i32_0 : i32, i32
  }
  func.func @transform_6(%arg0: i32, %arg1: i32) -> (i32, i32) {
    %c0_i32 = arith.constant 0 : i32
    %c0_i32_0 = arith.constant 0 : i32
    %c0_i32_1 = arith.constant 0 : i32
    return %c0_i32, %c0_i32_0 : i32, i32
  }
  func.func @transform_7(%arg0: i32, %arg1: i32) -> (i32, i32) {
    %c0_i32 = arith.constant 0 : i32
    %c0_i32_0 = arith.constant 0 : i32
    %c0_i32_1 = arith.constant 0 : i32
    return %c0_i32, %c0_i32_0 : i32, i32
  }
  func.func @transform_8(%arg0: i32, %arg1: i32) -> (i32, i32) {
    %c0_i32 = arith.constant 0 : i32
    %c0_i32_0 = arith.constant 0 : i32
    %c0_i32_1 = arith.constant 0 : i32
    return %c0_i32, %c0_i32_0 : i32, i32
  }
  func.func @transform_9(%arg0: i32, %arg1: i32) -> (i32, i32) {
    %c0_i32 = arith.constant 0 : i32
    %c0_i32_0 = arith.constant 0 : i32
    return %c0_i32, %arg1 : i32, i32
  }
}

</mosaic_0001>

<bundles_post_ra>
// kernel: tpu_custom_call.1
= control target key start
LH: loop header
LB: loop body
LE: loop exit
PB: predicated region body
PF: predicated region fallthrough
CT: control target
= control target key end

     0   :  { %14 = vsyncpa [#allocation11], 0  ;;  %s1242_s30 = smov 0   ;;  %s1244_s10 = smov 0   ;;  %s1538_s0 = inlined_call_operand.vmem [shape: f32[52,128], index: 0, kind: input, shape index: {}]   ;;  %s1539_s1 = inlined_call_operand.vmem [shape: f32[32,52], index: 1, kind: input, shape index: {}]   ;;  %s1540_s2 = inlined_call_operand.vmem [shape: f32[32,32], index: 2, kind: input, shape index: {}]   ;;  %s1541_s3 = inlined_call_operand.vmem [shape: f32[4,32], index: 3, kind: input, shape index: {}]   ;;  %s1542_s4 = inlined_call_operand.vmem [shape: f32[4,1], index: 4, kind: input, shape index: {}]   ;;  %s1543_s5 = inlined_call_operand.vmem [shape: f32[32,1], index: 5, kind: input, shape index: {}]   ;;  %s1544_s6 = inlined_call_operand.vmem [shape: f32[32,1], index: 6, kind: input, shape index: {}]   ;;  %s1545_s7 = inlined_call_operand.vmem [shape: f32[32,1], index: 7, kind: input, shape index: {}]   ;;  %s1546_s8 = inlined_call_operand.vmem [shape: f32[32,1], index: 8, kind: input, shape index: {}]   ;;  %s1547_s9 = inlined_call_operand.hbm [shape: f32[4,128], index: 9, kind: output, shape index: {}]  }
   0x1   :  { %s1246_s11 = smov 0  }
   0x2 LB: > { %s1016_s12 = sadd.s32 4294967295, %s1185_s11   ;;  %s32_s13 = sadd.s32 1, %s1181_s10  ;;  %s1185_s11 = sphi %s1246_s11, %s20_s11   ;;  %s1181_s10 = sphi %s1244_s10, %s1557_s10   ;;  %s1177_s30 = sphi %s1242_s30, %s1556_s30  }
   0x3   : > { %p34_p0 = scmp.ge.s32.totalorder %s32_s13, 3  ;;  %p1019_p1 = scmp.ge.s32.totalorder %s1185_s11, 1 }
   0x4   : > { %p299_p2 = scmp.lt.s32.totalorder %s1185_s11, 4 }
   0x5   : > { %s1559_s13 = smov (%p34_p0, %s32_s13), 0 }
   0x6   : > { %p300_p3 = pnand %p1019_p1, %p299_p2 }
   0x7   : > { %p1025_p4 = scmp.ne.s32.totalorder (!%p300_p3), %s1177_s30, 0 }
   0x8   : > { %303 = sbr.rel (%p300_p3) target bundleno = 1082 (0x43a), region = 56 }
   0xd   : > { %v343_v0 = vld [vmem:[%s1538_s0 + $0x30] sm:$0xf]  ;;  %vm357_vm0 = vcmask 1043456   ;;  %v342_v1 = vld [vmem:[%s1538_s0 + $0x28] sm:$0xff]  ;;  %v341_v2 = vld [vmem:[%s1538_s0 + $0x20] sm:$0xff]  ;;  %vm344_vm1 = vcmask 424960  }
   0xe   : > { %1042 = vmatpush.msk.msra.mxu2 %vm357_vm0, %v343_v0  ;;  %1043 = vmatpush.msk.msra.mxu3 %vm357_vm0, %v343_v0  ;;  %v340_v3 = vld [vmem:[%s1538_s0 + $0x18] sm:$0xff]  ;;  %v339_v4 = vld [vmem:[%s1538_s0 + $0x10] sm:$0xff]  ;;  %v338_v5 = vld [vmem:[%s1538_s0 + $0x8] sm:$0xff] }
   0xf   : > { %1020 = vmatpush.msk.msra.mxu0 %vm357_vm0, %v343_v0  ;;  %1041 = vmatpush.msk.msra.mxu1 %vm357_vm0, %v343_v0  ;;  %v337_v6 = vld [vmem:[%s1538_s0] sm:$0xff]  ;;  %v335_v7 = vld [vmem:[%s1539_s1 + $0x10] sm:$0xff]  ;;  %v336_v8 = vld [vmem:[%s1539_s1 + $0x18] sm:$0xff] }
  0x10   : > { %1045 = vmatpush.msra.mxu2 %v342_v1  ;;  %1046 = vmatpush.msra.mxu3 %v342_v1  ;;  %v333_v9 = vld [vmem:[%s1539_s1] sm:$0xff]  ;;  %v334_v10 = vld [vmem:[%s1539_s1 + $0x8] sm:$0xff] }
  0x11   : > { %371 = vmatpush.msra.mxu0 %v342_v1  ;;  %1044 = vmatpush.msra.mxu1 %v342_v1 }
  0x12   : > { %1048 = vmatpush.msra.mxu2 %v341_v2  ;;  %1049 = vmatpush.msra.mxu3 %v341_v2 }
  0x13   : > { %372 = vmatpush.msra.mxu0 %v341_v2  ;;  %1047 = vmatpush.msra.mxu1 %v341_v2 }
  0x14   : > { %1051 = vmatpush.msra.mxu2 %v340_v3  ;;  %1052 = vmatpush.msra.mxu3 %v340_v3 }
  0x15   : > { %373 = vmatpush.msra.mxu0 %v340_v3  ;;  %1050 = vmatpush.msra.mxu1 %v340_v3 }
  0x16   : > { %1054 = vmatpush.msra.mxu2 %v339_v4  ;;  %1055 = vmatpush.msra.mxu3 %v339_v4 }
  0x17   : > { %374 = vmatpush.msra.mxu0 %v339_v4  ;;  %1053 = vmatpush.msra.mxu1 %v339_v4 }
  0x18   : > { %1057 = vmatpush.msra.mxu2 %v338_v5  ;;  %1058 = vmatpush.msra.mxu3 %v338_v5 }
  0x19   : > { %375 = vmatpush.msra.mxu0 %v338_v5  ;;  %1056 = vmatpush.msra.mxu1 %v338_v5 }
  0x1a   : > { %1060 = vmatpush.msra.mxu2 %v337_v6  ;;  %1061 = vmatpush.msra.mxu3 %v337_v6 }
  0x1b   : > { %1023 = vmatmul.msk.f32.vlgmr.msra.gmra.mxu2 %vm344_vm1, %v335_v7  ;;  %1024 = vmatmul.msk.f32.vlgmr.msra.gmra.mxu3 %vm344_vm1, %v336_v8 }
  0x1c   : > { %376 = vmatpush.msra.mxu0 %v337_v6  ;;  %1059 = vmatpush.msra.mxu1 %v337_v6 }
  0x1d   : > { %1021 = vmatmul.msk.f32.vlgmr.msra.gmra.mxu0 %vm344_vm1, %v333_v9  ;;  %1022 = vmatmul.msk.f32.vlgmr.msra.gmra.mxu1 %vm344_vm1, %v334_v10 }
  0x9a   : > { %v1296_v11 = vpop.f32.mrf.mxu0  ;;  %v1298_v12 = vpop.f32.mrf.mxu1  ;;  %393 = sbr.rel (%p1025_p4) target bundleno = 295 (0x127), region = 60 }
  0x9e   : > { %v1300_v13 = vpop.f32.mrf.mxu2  ;;  %v1302_v14 = vpop.f32.mrf.mxu3 }
  0x9f   : > { %423 = vadd.xlane.f32.xlu1 %v1300_v13  ;;  %419 = vadd.xlane.f32.xlu0 %v1296_v11  ;;  %v440_v15 = vmul.f32 %v1296_v11, %v1296_v11  ;;  %v441_v16 = vmul.f32 %v1298_v12, %v1298_v12  ;;  %v443_v17 = vmul.f32 %v1302_v14, %v1302_v14  ;;  %vm398_vm2 = vcmask 7168  }
  0xa0   : > { %v442_v18 = vmul.f32 %v1300_v13, %v1300_v13  ;;  %v1187_v19 = vmov 0.0  }
  0xa1   : > { %444 = vadd.xlane.f32.xlu2 %v440_v15  ;;  %401 = vst.msk [vmem:[#allocation2 + $0x10] sm:$0xff] %vm398_vm2, %v1187_v19 }
  0xa2   : > { %407 = vst.msk [vmem:[#allocation4] sm:$0xff] %vm398_vm2, %v1187_v19 }
  0xa3   : > { %408 = vst.msk [vmem:[#allocation4 + $0x8] sm:$0xff] %vm398_vm2, %v1187_v19 }
  0xa4   : > { %409 = vst.msk [vmem:[#allocation4 + $0x10] sm:$0xff] %vm398_vm2, %v1187_v19 }
  0xa5   : > { %410 = vst.msk [vmem:[#allocation4 + $0x18] sm:$0xff] %vm398_vm2, %v1187_v19 }
  0xa6   : > { %411 = vst.msk [vmem:[#allocation5] sm:$0xff] %vm398_vm2, %v1187_v19 }
  0xa7   : > { %425 = vadd.xlane.f32.xlu1 %v1302_v14  ;;  %421 = vadd.xlane.f32.xlu0 %v1298_v12  ;;  %412 = vst.msk [vmem:[#allocation5 + $0x8] sm:$0xff] %vm398_vm2, %v1187_v19 }
  0xa8   : > { %413 = vst.msk [vmem:[#allocation5 + $0x10] sm:$0xff] %vm398_vm2, %v1187_v19  ;;  %v417_v20 = vld [vmem:[#allocation2 + $0x10] sm:$0xff] }
  0xa9   : > { %446 = vadd.xlane.f32.xlu2 %v441_v16  ;;  %414 = vst.msk [vmem:[#allocation5 + $0x18] sm:$0xff] %vm398_vm2, %v1187_v19 }
  0xaa   : > { %399 = vst.msk [vmem:[#allocation2] sm:$0xff] %vm398_vm2, %v1187_v19 }
  0xab   : > { %400 = vst.msk [vmem:[#allocation2 + $0x8] sm:$0xff] %vm398_vm2, %v1187_v19 }
  0xac   : > { %402 = vst.msk [vmem:[#allocation2 + $0x18] sm:$0xff] %vm398_vm2, %v1187_v19 }
  0xad   : > { %403 = vst.msk [vmem:[#allocation3] sm:$0xff] %vm398_vm2, %v1187_v19 }
  0xae   : > { %404 = vst.msk [vmem:[#allocation3 + $0x8] sm:$0xff] %vm398_vm2, %v1187_v19 }
  0xaf   : > { %450 = vadd.xlane.f32.xlu1 %v443_v17  ;;  %448 = vadd.xlane.f32.xlu0 %v442_v18  ;;  %405 = vst.msk [vmem:[#allocation3 + $0x10] sm:$0xff] %vm398_vm2, %v1187_v19 }
  0xb0   : > { %406 = vst.msk [vmem:[#allocation3 + $0x18] sm:$0xff] %vm398_vm2, %v1187_v19 }
  0xb1   : > { %v415_v21 = vld [vmem:[#allocation2] sm:$0xff] }
  0xb2   : > { %v416_v30 = vld [vmem:[#allocation2 + $0x8] sm:$0xff] }
  0xb3   : > { %v418_v29 = vld [vmem:[#allocation2 + $0x18] sm:$0xff] }
  0xb4   : > { %v436_v24 = vld [vmem:[#allocation3] sm:$0xff] }
  0xb5   : > { %v437_v33 = vld [vmem:[#allocation3 + $0x8] sm:$0xff] }
  0xb6   : > { %v438_v39 = vld [vmem:[#allocation3 + $0x10] sm:$0xff] }
  0xb7   : > { %v439_v38 = vld [vmem:[#allocation3 + $0x18] sm:$0xff] }
 0x112   : > { %v424_v22 = vpop.xlane.xlu1 %423  ;;  %v420_v23 = vpop.xlane.xlu0 %419 }
 0x113   : > { %v429_v25 = vadd.f32 %v424_v22, %v417_v20  ;;  %v427_v26 = vadd.f32 %v420_v23, %v415_v21 }
 0x114   : > { %v445_v27 = vpop.xlane.xlu2 %444 }
 0x115   : > { %434 = vst.msk [vmem:[#allocation2 + $0x10] sm:$0xff] %vm398_vm2, %v429_v25  ;;  %v452_v28 = vadd.f32 %v445_v27, %v436_v24 }
 0x116   : > { %432 = vst.msk [vmem:[#allocation2] sm:$0xff] %vm398_vm2, %v427_v26 }
 0x117   : > { %456 = vst.msk [vmem:[#allocation3] sm:$0xff] %vm398_vm2, %v452_v28 }
 0x11a   : > { %v426_v31 = vpop.xlane.xlu1 %425  ;;  %v422_v32 = vpop.xlane.xlu0 %421 }
 0x11b   : > { %v430_v34 = vadd.f32 %v426_v31, %v418_v29  ;;  %v428_v35 = vadd.f32 %v422_v32, %v416_v30 }
 0x11c   : > { %v447_v36 = vpop.xlane.xlu2 %446 }
 0x11d   : > { %435 = vst.msk [vmem:[#allocation2 + $0x18] sm:$0xff] %vm398_vm2, %v430_v34  ;;  %v453_v37 = vadd.f32 %v447_v36, %v437_v33 }
 0x11e   : > { %433 = vst.msk [vmem:[#allocation2 + $0x8] sm:$0xff] %vm398_vm2, %v428_v35 }
 0x11f   : > { %457 = vst.msk [vmem:[#allocation3 + $0x8] sm:$0xff] %vm398_vm2, %v453_v37 }
 0x122   : > { %v451_v40 = vpop.xlane.xlu1 %450  ;;  %v449_v41 = vpop.xlane.xlu0 %448 }
 0x123   : > { %v455_v42 = vadd.f32 %v451_v40, %v439_v38  ;;  %v454_v43 = vadd.f32 %v449_v41, %v438_v39 }
 0x125   : > { %459 = vst.msk [vmem:[#allocation3 + $0x18] sm:$0xff] %vm398_vm2, %v455_v42 }
 0x126   : > { %458 = vst.msk [vmem:[#allocation3 + $0x10] sm:$0xff] %vm398_vm2, %v454_v43 }
 0x127 PF: > { %p1026_p5 = scmp.le.s32.totalorder %s1177_s30, 0 }
 0x128   : > { %p464_p6 = scmp.eq.s32.totalorder (!%p1026_p5), %s1177_s30, 1 }
 0x129   : > { %463 = sbr.rel (%p1026_p5) target bundleno = 1076 (0x434), region = 68 }
 0x12e   : > { %469 = sbr.rel (!%p464_p6) target bundleno = 341 (0x155), region = 72  ;;  %v470_v44 = vld [vmem:[#allocation2] sm:$0xff] (%p464_p6)  ;;  %v471_v48 = vld [vmem:[#allocation2 + $0x8] sm:$0xff] (%p464_p6)  ;;  %v472_v52 = vld [vmem:[#allocation2 + $0x10] sm:$0xff] (%p464_p6)  ;;  %vm550_vm14 = vcmask (%p464_p6), 7168  }
 0x12f   : > { %v478_v45 = vld [vmem:[#allocation3] sm:$0xff] (%p464_p6)  ;;  %v1343_v46 = vmul.f32 (%p464_p6), 0.125, %v470_v44  ;;  %v479_v49 = vld [vmem:[#allocation3 + $0x8] sm:$0xff] (%p464_p6)  ;;  %v1345_v50 = vmul.f32 (%p464_p6), 0.125, %v471_v48  ;;  %v480_v53 = vld [vmem:[#allocation3 + $0x10] sm:$0xff] (%p464_p6)  ;;  %v1349_v55 = vmul.f32 (%p464_p6), 0.125, %v472_v52 }
 0x130   : > { %v482_v47 = vmul.f32 (%p464_p6), 0.125, %v478_v45  ;;  %v483_v51 = vmul.f32 (%p464_p6), 0.125, %v479_v49  ;;  %v484_v56 = vmul.f32 (%p464_p6), 0.125, %v480_v53  ;;  %v473_v57 = vld [vmem:[#allocation2 + $0x18] sm:$0xff] (%p464_p6)  ;;  %v542_v36 = vld [vmem:[%s1543_s5] sm:$0xff] (%p464_p6)  ;;  %v543_v39 = vld [vmem:[%s1543_s5 + $0x8] sm:$0xff] (%p464_p6) }
 0x131   : > { %v486_v54 = vmul.f32 (%p464_p6), %v1343_v46, %v1343_v46  ;;  %v481_v58 = vld [vmem:[#allocation3 + $0x18] sm:$0xff] (%p464_p6)  ;;  %v487_v59 = vmul.f32 (%p464_p6), %v1345_v50, %v1345_v50  ;;  %v1353_v60 = vmul.f32 (%p464_p6), 0.125, %v473_v57  ;;  %v488_v63 = vmul.f32 (%p464_p6), %v1349_v55, %v1349_v55  ;;  %v544_v43 = vld [vmem:[%s1543_s5 + $0x10] sm:$0xff] (%p464_p6)  ;;  %v555_v52 = vld [vmem:[%s1544_s6] sm:$0xff] (%p464_p6) }
 0x132   : > { %v485_v61 = vmul.f32 (%p464_p6), 0.125, %v481_v58  ;;  %v545_v48 = vld [vmem:[%s1543_s5 + $0x18] sm:$0xff] (%p464_p6)  ;;  %v556_v57 = vld [vmem:[%s1544_s6 + $0x8] sm:$0xff] (%p464_p6) }
 0x133   : > { %v490_v62 = vsub.f32 %v482_v47, %v486_v54  ;;  %v491_v0 = vsub.f32 %v483_v51, %v487_v59  ;;  %v489_v1 = vmul.f32 %v1353_v60, %v1353_v60  ;;  %v492_v3 = vsub.f32 %v484_v56, %v488_v63 }
 0x135   : > { %v494_v2 = vmax.f32 %v490_v62, 0.0  ;;  %v495_v4 = vmax.f32 %v491_v0, 0.0  ;;  %v493_v5 = vsub.f32 %v485_v61, %v489_v1  ;;  %v496_v7 = vmax.f32 %v492_v3, 0.0  ;;  %v557_v61 = vld [vmem:[%s1544_s6 + $0x10] sm:$0xff] }
 0x137   : > { %v498_v6 = vadd.f32 1e-05, %v494_v2  ;;  %v499_v8 = vadd.f32 1e-05, %v495_v4  ;;  %v497_v9 = vmax.f32 %v493_v5, 0.0 }
 0x138   : > { %v500_v10 = vadd.f32 1e-05, %v496_v7 }
 0x139   : > { %1109 = vrsqrt.f32 %v498_v6  ;;  %v501_v15 = vadd.f32 1e-05, %v497_v9  ;;  %vm508_vm3 = vweird.f32 %v498_v6  ;;  %vm518_vm5 = vweird.f32 %v499_v8 }
 0x13a   : > { %1111 = vrsqrt.f32 %v499_v8  ;;  %vm528_vm7 = vweird.f32 %v500_v10 }
 0x13b   : > { %1113 = vrsqrt.f32 %v500_v10  ;;  %vm538_vm10 = vweird.f32 %v501_v15 }
 0x13c   : > { %1115 = vrsqrt.f32 %v501_v15 }
 0x13f   : > { %v1110_v16 = vpop.eup %1109 }
 0x140   : > { %v1112_v17 = vpop.eup %1111  ;;  %v503_v18 = vmul.f32 %v1110_v16, %v498_v6  ;;  %vm509_vm4 = vweird.f32 %v1110_v16 }
 0x141   : > { %v1114_v19 = vpop.eup %1113  ;;  %v513_v20 = vmul.f32 %v1112_v17, %v499_v8  ;;  %vm519_vm6 = vweird.f32 %v1112_v17  ;;  %vm1359_vm9 = vmor %vm508_vm3, %vm509_vm4 }
 0x142   : > { %v1116_v21 = vpop.eup %1115  ;;  %v504_v22 = vmul.f32 %v1110_v16, %v503_v18  ;;  %v523_v23 = vmul.f32 %v1114_v19, %v500_v10  ;;  %vm529_vm8 = vweird.f32 %v1114_v19  ;;  %vm520_vm12 = vmor %vm518_vm5, %vm519_vm6 }
 0x143   : > { %v514_v24 = vmul.f32 %v1112_v17, %v513_v20  ;;  %v533_v25 = vmul.f32 %v1116_v21, %v501_v15  ;;  %vm539_vm11 = vweird.f32 %v1116_v21  ;;  %vm530_vm13 = vmor %vm528_vm7, %vm529_vm8 }
 0x144   : > { %v505_v26 = vmul.f32 0.5, %v504_v22  ;;  %v524_v27 = vmul.f32 %v1114_v19, %v523_v23  ;;  %vm540_vm15 = vmor %vm538_vm10, %vm539_vm11 }
 0x145   : > { %v515_v28 = vmul.f32 0.5, %v514_v24  ;;  %v534_v29 = vmul.f32 %v1116_v21, %v533_v25 }
 0x146   : > { %v506_v30 = vsub.f32 1.5, %v505_v26  ;;  %v525_v31 = vmul.f32 0.5, %v524_v27 }
 0x147   : > { %v516_v33 = vsub.f32 1.5, %v515_v28  ;;  %v535_v34 = vmul.f32 0.5, %v534_v29 }
 0x148   : > { %v507_v35 = vmul.f32 %v1110_v16, %v506_v30  ;;  %v526_v37 = vsub.f32 1.5, %v525_v31 }
 0x149   : > { %v517_v38 = vmul.f32 %v1112_v17, %v516_v33  ;;  %v536_v40 = vsub.f32 1.5, %v535_v34 }
 0x14a   : > { %v511_v41 = vsel %vm1359_vm9, %v1110_v16, %v507_v35  ;;  %v527_v42 = vmul.f32 %v1114_v19, %v526_v37 }
 0x14b   : > { %v546_v44 = vmul.f32 %v542_v36, %v511_v41  ;;  %v521_v45 = vsel %vm520_vm12, %v1112_v17, %v517_v38  ;;  %v537_v47 = vmul.f32 %v1116_v21, %v536_v40 }
 0x14c   : > { %v547_v49 = vmul.f32 %v543_v39, %v521_v45  ;;  %v531_v51 = vsel %vm530_vm13, %v1114_v19, %v527_v42 }
 0x14d   : > { %551 = vst.msk [vmem:[#allocation6] sm:$0xff] %vm550_vm14, %v546_v44  ;;  %v548_v53 = vmul.f32 %v544_v43, %v531_v51  ;;  %v541_v54 = vsel %vm540_vm15, %v1116_v21, %v537_v47  ;;  %v559_v56 = vmul.f32 %v546_v44, %v1343_v46  ;;  %v558_v46 = vld [vmem:[%s1544_s6 + $0x18] sm:$0xff] }
 0x14e   : > { %552 = vst.msk [vmem:[#allocation6 + $0x8] sm:$0xff] %vm550_vm14, %v547_v49  ;;  %v549_v58 = vmul.f32 %v545_v48, %v541_v54  ;;  %v560_v59 = vmul.f32 %v547_v49, %v1345_v50 }
 0x14f   : > { %553 = vst.msk [vmem:[#allocation6 + $0x10] sm:$0xff] %vm550_vm14, %v548_v53  ;;  %v563_v62 = vsub.f32 %v555_v52, %v559_v56  ;;  %v561_v63 = vmul.f32 %v548_v53, %v1349_v55 }
 0x150   : > { %554 = vst.msk [vmem:[#allocation6 + $0x18] sm:$0xff] %vm550_vm14, %v549_v58  ;;  %v564_v0 = vsub.f32 %v556_v57, %v560_v59  ;;  %v562_v1 = vmul.f32 %v549_v58, %v1353_v60 }
 0x151   : > { %567 = vst.msk [vmem:[#allocation7] sm:$0xff] %vm550_vm14, %v563_v62  ;;  %v565_v50 = vsub.f32 %v557_v61, %v561_v63 }
 0x152   : > { %568 = vst.msk [vmem:[#allocation7 + $0x8] sm:$0xff] %vm550_vm14, %v564_v0  ;;  %v566_v2 = vsub.f32 %v558_v46, %v562_v1 }
 0x153   : > { %569 = vst.msk [vmem:[#allocation7 + $0x10] sm:$0xff] %vm550_vm14, %v565_v50 }
 0x154   : > { %570 = vst.msk [vmem:[#allocation7 + $0x18] sm:$0xff] %vm550_vm14, %v566_v2 }
 0x155 PF: > { %v1188_v4 = vmov 0   ;;  %v572_v6 = vld [vmem:[#allocation6 + $0x8] sm:$0xff]  ;;  %v571_v7 = vld [vmem:[#allocation6] sm:$0xff]  ;;  %vm643_vm4 = vcmask 261120   ;;  %v642_v35 = vld [vmem:[%s1540_s2 + $0x18] sm:$0xff]  ;;  %p1032_p7 = scmp.ne.s32.totalorder %s1177_s30, 1 }
 0x156   : > { %1118 = vset.pattern.permute.xlu1 %v1188_v4  ;;  %1117 = vset.pattern.permute.xlu0 %v1188_v4  ;;  %v573_v60 = vld [vmem:[#allocation6 + $0x10] sm:$0xff]  ;;  %v639_v36 = vld [vmem:[%s1540_s2] sm:$0xff]  ;;  %v640_v37 = vld [vmem:[%s1540_s2 + $0x8] sm:$0xff] }
 0x157   : > { %v574_v3 = vld [vmem:[#allocation6 + $0x18] sm:$0xff]  ;;  %1119 = vset.pattern.permute.xlu2 %v1188_v4 }
 0x158   : > { %592 = vperm.xlu0 %1117, %v574_v3   ;;  %v599_v9 = vld [vmem:[#allocation7] sm:$0xff] }
 0x159   : > { %v600_v8 = vld [vmem:[#allocation7 + $0x8] sm:$0xff] }
 0x15a   : > { %v601_v5 = vld [vmem:[#allocation7 + $0x10] sm:$0xff] }
 0x15b   : > { %v602_v55 = vld [vmem:[#allocation7 + $0x18] sm:$0xff]  ;;  %615 = vperm.xlu2 %1119, %v601_v5  }
 0x15c   : > { %620 = vperm.xlu1 %1118, %v602_v55  }
 0x160   : > { %587 = vperm.xlu0 %1117, %v573_v60  }
 0x163   : > { %577 = vperm.xlu2 %1119, %v571_v7  }
 0x164   : > { %582 = vperm.xlu1 %1118, %v572_v6  }
 0x168   : > { %610 = vperm.xlu0 %1117, %v600_v8  }
 0x16c   : > { %605 = vperm.xlu1 %1118, %v599_v9  }
 0x1b5   : > { %v616_v17 = vpop.permute.xlu2 %615 }
 0x1bd   : > { %v578_v25 = vpop.permute.xlu2 %577 }
 0x1ca   : > { %v593_v15 = vpop.permute.xlu0 %592 }
 0x1cb   : > { %v598_v16 = vmul.f32 %v593_v15, %v1302_v14  ;;  %v595_v14 = vmul.f32 %v578_v25, %v1296_v11  ;;  %v641_v11 = vld [vmem:[%s1540_s2 + $0x10] sm:$0xff] }
 0x1ce   : > { %v621_v10 = vpop.permute.xlu1 %620 }
 0x1cf   : > { %v626_v18 = vadd.f32 %v621_v10, %v598_v16 }
 0x1d1   : > { %v634_v19 = vmul.f32 0.01, %v626_v18  ;;  %vm630_vm0 = vcmp.gt.f32.partialorder %v626_v18, 0.0 }
 0x1d2   : > { %v588_v21 = vpop.permute.xlu0 %587 }
 0x1d3   : > { %v638_v20 = vsel %vm630_vm0, %v626_v18, %v634_v19  ;;  %v597_v23 = vmul.f32 %v588_v21, %v1300_v13 }
 0x1d4   : > { %668 = vmatpush.msra.mxu0 %v638_v20  ;;  %1062 = vmatpush.msra.mxu1 %v638_v20 }
 0x1d5   : > { %1063 = vmatpush.msra.mxu2 %v638_v20  ;;  %1064 = vmatpush.msra.mxu3 %v638_v20  ;;  %v625_v24 = vadd.f32 %v616_v17, %v597_v23 }
 0x1d6   : > { %v583_v22 = vpop.permute.xlu1 %582 }
 0x1d7   : > { %v633_v26 = vmul.f32 0.01, %v625_v24  ;;  %vm629_vm1 = vcmp.gt.f32.partialorder %v625_v24, 0.0  ;;  %v596_v27 = vmul.f32 %v583_v22, %v1298_v12 }
 0x1d9   : > { %v637_v28 = vsel %vm629_vm1, %v625_v24, %v633_v26 }
 0x1da   : > { %669 = vmatpush.msra.mxu0 %v637_v28  ;;  %1065 = vmatpush.msra.mxu1 %v637_v28  ;;  %v611_v29 = vpop.permute.xlu0 %610 }
 0x1db   : > { %1066 = vmatpush.msra.mxu2 %v637_v28  ;;  %1067 = vmatpush.msra.mxu3 %v637_v28  ;;  %v624_v31 = vadd.f32 %v611_v29, %v596_v27 }
 0x1dd   : > { %vm628_vm2 = vcmp.gt.f32.partialorder %v624_v31, 0.0  ;;  %v632_v33 = vmul.f32 0.01, %v624_v31 }
 0x1de   : > { %v606_v30 = vpop.permute.xlu1 %605 }
 0x1df   : > { %v623_v32 = vadd.f32 %v606_v30, %v595_v14  ;;  %v636_v34 = vsel %vm628_vm2, %v624_v31, %v632_v33 }
 0x1e0   : > { %670 = vmatpush.msra.mxu0 %v636_v34  ;;  %1068 = vmatpush.msra.mxu1 %v636_v34 }
 0x1e1   : > { %v631_v13 = vmul.f32 0.01, %v623_v32  ;;  %vm627_vm3 = vcmp.gt.f32.partialorder %v623_v32, 0.0  ;;  %1069 = vmatpush.msra.mxu2 %v636_v34  ;;  %1070 = vmatpush.msra.mxu3 %v636_v34 }
 0x1e3   : > { %v635_v12 = vsel %vm627_vm3, %v623_v32, %v631_v13 }
 0x1e4   : > { %671 = vmatpush.msra.mxu0 %v635_v12  ;;  %1071 = vmatpush.msra.mxu1 %v635_v12 }
 0x1e5   : > { %1072 = vmatpush.msra.mxu2 %v635_v12  ;;  %1073 = vmatpush.msra.mxu3 %v635_v12 }
 0x1e6   : > { %1030 = vmatmul.msk.f32.vlgmr.msra.gmra.mxu2 %vm643_vm4, %v641_v11  ;;  %1031 = vmatmul.msk.f32.vlgmr.msra.gmra.mxu3 %vm643_vm4, %v642_v35 }
 0x1e7   : > { %1028 = vmatmul.msk.f32.vlgmr.msra.gmra.mxu0 %vm643_vm4, %v639_v36  ;;  %1029 = vmatmul.msk.f32.vlgmr.msra.gmra.mxu1 %vm643_vm4, %v640_v37 }
 0x264   : > { %v1421_v38 = vpop.f32.mrf.mxu0  ;;  %v1423_v39 = vpop.f32.mrf.mxu1 }
 0x265   : > { %687 = sbr.rel (%p1032_p7) target bundleno = 762 (0x2fa), region = 76 }
 0x269   : > { %v1425_v40 = vpop.f32.mrf.mxu2  ;;  %v1427_v41 = vpop.f32.mrf.mxu3 }
 0x26a   : > { %v688_v42 = vlaneseq  ;;  %v1189_v44 = vmov 0.0   ;;  %v702_v57 = vld [vmem:[#allocation4 + $0x10] sm:$0xff]  ;;  %v700_v58 = vld [vmem:[#allocation4] sm:$0xff]  ;;  %vm716_vm6 = vcmask 7168   ;;  %v703_v50 = vld [vmem:[#allocation4 + $0x18] sm:$0xff] }
 0x26b   : > { %v721_v62 = vld [vmem:[#allocation5] sm:$0xff]  ;;  %v701_v2 = vld [vmem:[#allocation4 + $0x8] sm:$0xff]  ;;  %v724_v8 = vld [vmem:[#allocation5 + $0x18] sm:$0xff] }
 0x26c   : > { %v689_v43 = vand.u32 127, %v688_v42  ;;  %v722_v4 = vld [vmem:[#allocation5 + $0x8] sm:$0xff]  ;;  %v723_v9 = vld [vmem:[#allocation5 + $0x10] sm:$0xff] }
 0x26e   : > { %vm693_vm5 = vcmp.lt.s32.totalorder %v689_v43, 8 }
 0x26f   : > { %v1033_v45 = vsel %vm693_vm5, 1.0, %v1189_v44 }
 0x270   : > { %v698_v47 = vmul.f32 %v1033_v45, %v1425_v40  ;;  %v696_v48 = vmul.f32 %v1033_v45, %v1421_v38  ;;  %v699_v51 = vmul.f32 %v1033_v45, %v1427_v41  ;;  %v697_v52 = vmul.f32 %v1033_v45, %v1423_v39 }
 0x272   : > { %708 = vadd.xlane.f32.xlu1 %v698_v47  ;;  %704 = vadd.xlane.f32.xlu0 %v696_v48  ;;  %v725_v49 = vmul.f32 %v696_v48, %v696_v48  ;;  %v726_v53 = vmul.f32 %v697_v52, %v697_v52  ;;  %v728_v54 = vmul.f32 %v699_v51, %v699_v51 }
 0x273   : > { %v727_v56 = vmul.f32 %v698_v47, %v698_v47 }
 0x274   : > { %729 = vadd.xlane.f32.xlu2 %v725_v49 }
 0x27a   : > { %710 = vadd.xlane.f32.xlu1 %v699_v51  ;;  %706 = vadd.xlane.f32.xlu0 %v697_v52 }
 0x27c   : > { %731 = vadd.xlane.f32.xlu2 %v726_v53 }
 0x282   : > { %735 = vadd.xlane.f32.xlu1 %v728_v54  ;;  %733 = vadd.xlane.f32.xlu0 %v727_v56 }
 0x2e5   : > { %v709_v59 = vpop.xlane.xlu1 %708  ;;  %v705_v61 = vpop.xlane.xlu0 %704 }
 0x2e6   : > { %v714_v63 = vadd.f32 %v709_v59, %v702_v57  ;;  %v712_v46 = vadd.f32 %v705_v61, %v700_v58 }
 0x2e7   : > { %v730_v0 = vpop.xlane.xlu2 %729 }
 0x2e8   : > { %719 = vst.msk [vmem:[#allocation4 + $0x10] sm:$0xff] %vm716_vm6, %v714_v63  ;;  %v737_v1 = vadd.f32 %v730_v0, %v721_v62 }
 0x2e9   : > { %717 = vst.msk [vmem:[#allocation4] sm:$0xff] %vm716_vm6, %v712_v46 }
 0x2ea   : > { %741 = vst.msk [vmem:[#allocation5] sm:$0xff] %vm716_vm6, %v737_v1 }
 0x2ed   : > { %v711_v55 = vpop.xlane.xlu1 %710  ;;  %v707_v3 = vpop.xlane.xlu0 %706 }
 0x2ee   : > { %v715_v5 = vadd.f32 %v711_v55, %v703_v50  ;;  %v713_v60 = vadd.f32 %v707_v3, %v701_v2 }
 0x2ef   : > { %v732_v6 = vpop.xlane.xlu2 %731 }
 0x2f0   : > { %720 = vst.msk [vmem:[#allocation4 + $0x18] sm:$0xff] %vm716_vm6, %v715_v5  ;;  %v738_v7 = vadd.f32 %v732_v6, %v722_v4 }
 0x2f1   : > { %718 = vst.msk [vmem:[#allocation4 + $0x8] sm:$0xff] %vm716_vm6, %v713_v60 }
 0x2f2   : > { %742 = vst.msk [vmem:[#allocation5 + $0x8] sm:$0xff] %vm716_vm6, %v738_v7 }
 0x2f5   : > { %v736_v10 = vpop.xlane.xlu1 %735  ;;  %v734_v15 = vpop.xlane.xlu0 %733 }
 0x2f6   : > { %v740_v16 = vadd.f32 %v736_v10, %v724_v8  ;;  %v739_v17 = vadd.f32 %v734_v15, %v723_v9 }
 0x2f8   : > { %744 = vst.msk [vmem:[#allocation5 + $0x18] sm:$0xff] %vm716_vm6, %v740_v16 }
 0x2f9   : > { %743 = vst.msk [vmem:[#allocation5 + $0x10] sm:$0xff] %vm716_vm6, %v739_v17 }
 0x2fa PF: > { %p1034_p8 = scmp.ne.s32.totalorder %s1177_s30, 2 }
 0x2fc   : > { %748 = sbr.rel (%p1034_p8) target bundleno = 1076 (0x434), region = 80 }
 0x301   : > { %v755_v18 = vld [vmem:[#allocation4 + $0x18] sm:$0xff]  ;;  %v1190_v20 = vmov 0   ;;  %v753_v23 = vld [vmem:[#allocation4 + $0x8] sm:$0xff]  ;;  %v754_v27 = vld [vmem:[#allocation4 + $0x10] sm:$0xff]  ;;  %vm832_vm2 = vcmask 7168  }
 0x302   : > { %v763_v19 = vld [vmem:[#allocation5 + $0x18] sm:$0xff]  ;;  %1121 = vset.pattern.permute.xlu1 %v1190_v20  ;;  %1120 = vset.pattern.permute.xlu0 %v1190_v20  ;;  %v1443_v21 = vmul.f32 0.125, %v755_v18  ;;  %v761_v24 = vld [vmem:[#allocation5 + $0x8] sm:$0xff]  ;;  %v1445_v25 = vmul.f32 0.125, %v753_v23  ;;  %v762_v14 = vld [vmem:[#allocation5 + $0x10] sm:$0xff]  ;;  %v1449_v30 = vmul.f32 0.125, %v754_v27 }
 0x303   : > { %v767_v22 = vmul.f32 0.125, %v763_v19  ;;  %v765_v26 = vmul.f32 0.125, %v761_v24  ;;  %1122 = vset.pattern.permute.xlu2 %v1190_v20  ;;  %v752_v28 = vld [vmem:[#allocation4] sm:$0xff]  ;;  %v766_v31 = vmul.f32 0.125, %v762_v14  ;;  %v827_v7 = vld [vmem:[%s1545_s7 + $0x18] sm:$0xff]  ;;  %v825_v10 = vld [vmem:[%s1545_s7 + $0x8] sm:$0xff] }
 0x304   : > { %v771_v29 = vmul.f32 %v1443_v21, %v1443_v21  ;;  %v1451_v32 = vmul.f32 0.125, %v752_v28  ;;  %v760_v33 = vld [vmem:[#allocation5] sm:$0xff]  ;;  %v769_v13 = vmul.f32 %v1445_v25, %v1445_v25  ;;  %v770_v11 = vmul.f32 %v1449_v30, %v1449_v30  ;;  %v826_v19 = vld [vmem:[%s1545_s7 + $0x10] sm:$0xff]  ;;  %v840_v28 = vld [vmem:[%s1546_s8 + $0x18] sm:$0xff] }
 0x305   : > { %v764_v34 = vmul.f32 0.125, %v760_v33  ;;  %v838_v33 = vld [vmem:[%s1546_s8 + $0x8] sm:$0xff] }
 0x306   : > { %v775_v12 = vsub.f32 %v767_v22, %v771_v29  ;;  %v768_v35 = vmul.f32 %v1451_v32, %v1451_v32  ;;  %v773_v36 = vsub.f32 %v765_v26, %v769_v13  ;;  %v774_v42 = vsub.f32 %v766_v31, %v770_v11  ;;  %v824_v26 = vld [vmem:[%s1545_s7] sm:$0xff] }
 0x308   : > { %v779_v37 = vmax.f32 %v775_v12, 0.0  ;;  %v772_v43 = vsub.f32 %v764_v34, %v768_v35  ;;  %v777_v44 = vmax.f32 %v773_v36, 0.0  ;;  %v778_v47 = vmax.f32 %v774_v42, 0.0  ;;  %v839_v12 = vld [vmem:[%s1546_s8 + $0x10] sm:$0xff]  ;;  %v837_v36 = vld [vmem:[%s1546_s8] sm:$0xff] }
 0x30a   : > { %v783_v45 = vadd.f32 1e-05, %v779_v37  ;;  %v776_v48 = vmax.f32 %v772_v43, 0.0  ;;  %v781_v49 = vadd.f32 1e-05, %v777_v44 }
 0x30b   : > { %v782_v51 = vadd.f32 1e-05, %v778_v47 }
 0x30c   : > { %1123 = vrsqrt.f32 %v783_v45  ;;  %v780_v52 = vadd.f32 1e-05, %v776_v48  ;;  %vm820_vm7 = vweird.f32 %v783_v45  ;;  %vm800_vm9 = vweird.f32 %v781_v49 }
 0x30d   : > { %1125 = vrsqrt.f32 %v781_v49  ;;  %vm810_vm11 = vweird.f32 %v782_v51 }
 0x30e   : > { %1127 = vrsqrt.f32 %v782_v51  ;;  %vm790_vm14 = vweird.f32 %v780_v52 }
 0x30f   : > { %1129 = vrsqrt.f32 %v780_v52 }
 0x312   : > { %v1124_v53 = vpop.eup %1123 }
 0x313   : > { %v1126_v54 = vpop.eup %1125  ;;  %v815_v56 = vmul.f32 %v1124_v53, %v783_v45  ;;  %vm821_vm8 = vweird.f32 %v1124_v53 }
 0x314   : > { %v1128_v57 = vpop.eup %1127  ;;  %v795_v58 = vmul.f32 %v1126_v54, %v781_v49  ;;  %vm801_vm10 = vweird.f32 %v1126_v54  ;;  %vm1459_vm13 = vmor %vm820_vm7, %vm821_vm8 }
 0x315   : > { %v1130_v59 = vpop.eup %1129  ;;  %v816_v61 = vmul.f32 %v1124_v53, %v815_v56  ;;  %v805_v62 = vmul.f32 %v1128_v57, %v782_v51  ;;  %vm811_vm12 = vweird.f32 %v1128_v57  ;;  %vm802_vm0 = vmor %vm800_vm9, %vm801_vm10 }
 0x316   : > { %v796_v63 = vmul.f32 %v1126_v54, %v795_v58  ;;  %v785_v46 = vmul.f32 %v1130_v59, %v780_v52  ;;  %vm791_vm15 = vweird.f32 %v1130_v59  ;;  %vm1469_vm1 = vmor %vm810_vm11, %vm811_vm12  ;;  %v922_v52 = vld [vmem:[%s1542_s4] sm:$0xf] }
 0x317   : > { %v817_v0 = vmul.f32 0.5, %v816_v61  ;;  %v806_v1 = vmul.f32 %v1128_v57, %v805_v62  ;;  %vm1478_vm3 = vmor %vm790_vm14, %vm791_vm15 }
 0x318   : > { %v797_v50 = vmul.f32 0.5, %v796_v63  ;;  %v786_v2 = vmul.f32 %v1130_v59, %v785_v46 }
 0x319   : > { %v818_v55 = vsub.f32 1.5, %v817_v0  ;;  %v807_v3 = vmul.f32 0.5, %v806_v1 }
 0x31a   : > { %v798_v5 = vsub.f32 1.5, %v797_v50  ;;  %v787_v60 = vmul.f32 0.5, %v786_v2 }
 0x31b   : > { %v819_v6 = vmul.f32 %v1124_v53, %v818_v55  ;;  %v808_v8 = vsub.f32 1.5, %v807_v3 }
 0x31c   : > { %v799_v9 = vmul.f32 %v1126_v54, %v798_v5  ;;  %v788_v16 = vsub.f32 1.5, %v787_v60 }
 0x31d   : > { %v823_v17 = vsel %vm1459_vm13, %v1124_v53, %v819_v6  ;;  %v809_v18 = vmul.f32 %v1128_v57, %v808_v8 }
 0x31e   : > { %v831_v22 = vmul.f32 %v827_v7, %v823_v17  ;;  %v803_v23 = vsel %vm802_vm0, %v1126_v54, %v799_v9  ;;  %v789_v24 = vmul.f32 %v1130_v59, %v788_v16 }
 0x31f   : > { %v829_v27 = vmul.f32 %v825_v10, %v803_v23  ;;  %v813_v14 = vsel %vm1469_vm1, %v1128_v57, %v809_v18 }
 0x320   : > { %836 = vst.msk [vmem:[#allocation8 + $0x18] sm:$0xff] %vm832_vm2, %v831_v22  ;;  %v844_v29 = vmul.f32 %v831_v22, %v1443_v21  ;;  %v830_v31 = vmul.f32 %v826_v19, %v813_v14  ;;  %v793_v13 = vsel %vm1478_vm3, %v1130_v59, %v789_v24 }
 0x321   : > { %834 = vst.msk [vmem:[#allocation8 + $0x8] sm:$0xff] %vm832_vm2, %v829_v27  ;;  %v842_v34 = vmul.f32 %v829_v27, %v1445_v25  ;;  %v828_v11 = vmul.f32 %v824_v26, %v793_v13 }
 0x322   : > { %835 = vst.msk [vmem:[#allocation8 + $0x10] sm:$0xff] %vm832_vm2, %v830_v31  ;;  %v848_v21 = vsub.f32 %v840_v28, %v844_v29  ;;  %v843_v35 = vmul.f32 %v830_v31, %v1449_v30 }
 0x323   : > { %v846_v37 = vsub.f32 %v838_v33, %v842_v34  ;;  %v841_v42 = vmul.f32 %v828_v11, %v1451_v32  ;;  %833 = vst.msk [vmem:[#allocation8] sm:$0xff] %vm832_vm2, %v828_v11 }
 0x324   : > { %852 = vst.msk [vmem:[#allocation9 + $0x18] sm:$0xff] %vm832_vm2, %v848_v21  ;;  %v847_v25 = vsub.f32 %v839_v12, %v843_v35 }
 0x325   : > { %850 = vst.msk [vmem:[#allocation9 + $0x8] sm:$0xff] %vm832_vm2, %v846_v37  ;;  %v845_v43 = vsub.f32 %v837_v36, %v841_v42 }
 0x326   : > { %851 = vst.msk [vmem:[#allocation9 + $0x10] sm:$0xff] %vm832_vm2, %v847_v25 }
 0x327   : > { %v856_v44 = vld [vmem:[#allocation8 + $0x18] sm:$0xff]  ;;  %849 = vst.msk [vmem:[#allocation9] sm:$0xff] %vm832_vm2, %v845_v43 }
 0x328   : > { %874 = vperm.xlu0 %1120, %v856_v44   ;;  %v854_v30 = vld [vmem:[#allocation8 + $0x8] sm:$0xff] }
 0x329   : > { %864 = vperm.xlu1 %1121, %v854_v30   ;;  %v855_v45 = vld [vmem:[#allocation8 + $0x10] sm:$0xff] }
 0x32a   : > { %v853_v32 = vld [vmem:[#allocation8] sm:$0xff] }
 0x32b   : > { %v884_v48 = vld [vmem:[#allocation9 + $0x18] sm:$0xff] }
 0x32c   : > { %v882_v49 = vld [vmem:[#allocation9 + $0x8] sm:$0xff] }
 0x32d   : > { %v883_v47 = vld [vmem:[#allocation9 + $0x10] sm:$0xff] }
 0x32e   : > { %897 = vperm.xlu2 %1122, %v883_v47   ;;  %v881_v51 = vld [vmem:[#allocation9] sm:$0xff] }
 0x330   : > { %869 = vperm.xlu0 %1120, %v855_v45  }
 0x331   : > { %902 = vperm.xlu1 %1121, %v884_v48  }
 0x336   : > { %859 = vperm.xlu2 %1122, %v853_v32  }
 0x338   : > { %892 = vperm.xlu0 %1120, %v882_v49  }
 0x339   : > { %887 = vperm.xlu1 %1121, %v881_v51  }
 0x33e   : > { %925 = vperm.xlu2 %1122, %v922_v52  }
 0x388   : > { %v898_v56 = vpop.permute.xlu2 %897 }
 0x390   : > { %v860_v2 = vpop.permute.xlu2 %859 }
 0x391   : > { %v877_v3 = vmul.f32 %v860_v2, %v1421_v38 }
 0x398   : > { %v926_v38 = vpop.permute.xlu2 %925 }
 0x39a   : > { %v875_v53 = vpop.permute.xlu0 %874 }
 0x39b   : > { %v865_v54 = vpop.permute.xlu1 %864  ;;  %v880_v57 = vmul.f32 %v875_v53, %v1427_v41 }
 0x39c   : > { %v878_v50 = vmul.f32 %v865_v54, %v1423_v39  ;;  %v921_v39 = vld [vmem:[%s1541_s3] sm:$0xf] }
 0x3a2   : > { %v870_v58 = vpop.permute.xlu0 %869 }
 0x3a3   : > { %v879_v59 = vmul.f32 %v870_v58, %v1425_v40  ;;  %v903_v61 = vpop.permute.xlu1 %902 }
 0x3a4   : > { %v908_v62 = vadd.f32 %v903_v61, %v880_v57 }
 0x3a5   : > { %v907_v63 = vadd.f32 %v898_v56, %v879_v59 }
 0x3a6   : > { %vm912_vm5 = vcmp.gt.f32.partialorder %v908_v62, 0.0  ;;  %v916_v46 = vmul.f32 0.01, %v908_v62 }
 0x3a7   : > { %vm911_vm6 = vcmp.gt.f32.partialorder %v907_v63, 0.0  ;;  %v915_v0 = vmul.f32 0.01, %v907_v63 }
 0x3a8   : > { %v920_v1 = vsel %vm912_vm5, %v908_v62, %v916_v46 }
 0x3a9   : > { %943 = vmatpush.msra.mxu0 %v920_v1  ;;  %v919_v55 = vsel %vm911_vm6, %v907_v63, %v915_v0 }
 0x3aa   : > { %v893_v4 = vpop.permute.xlu0 %892 }
 0x3ab   : > { %v906_v41 = vadd.f32 %v893_v4, %v878_v50  ;;  %944 = vmatpush.msra.mxu0 %v919_v55  ;;  %v888_v5 = vpop.permute.xlu1 %887 }
 0x3ac   : > { %v905_v40 = vadd.f32 %v888_v5, %v877_v3 }
 0x3ad   : > { %vm910_vm7 = vcmp.gt.f32.partialorder %v906_v41, 0.0  ;;  %v914_v60 = vmul.f32 0.01, %v906_v41 }
 0x3ae   : > { %vm909_vm8 = vcmp.gt.f32.partialorder %v905_v40, 0.0  ;;  %v913_v6 = vmul.f32 0.01, %v905_v40 }
 0x3af   : > { %v918_v7 = vsel %vm910_vm7, %v906_v41, %v914_v60 }
 0x3b0   : > { %945 = vmatpush.msra.mxu0 %v918_v7  ;;  %v917_v8 = vsel %vm909_vm8, %v905_v40, %v913_v6 }
 0x3b2   : > { %946 = vmatpush.msra.mxu0 %v917_v8 }
 0x3b3   : > { %1035 = vmatmul.msk.f32.vlgmr.msra.gmra.mxu0 %vm643_vm4, %v921_v39 }
 0x430   : > { %v948_v9 = vpop.f32.mrf.mxu0 }
 0x431   : > { %v949_v10 = vadd.f32 %v948_v9, %v926_v38 }
 0x433   : > { %951 = vst [vmem:[#allocation10] sm:$0xf] %v949_v10 }
 0x434 PF: > { %p1078_p9 = scmp.eq.s32.totalorder %s1016_s12, 2  ;;  %s962_s16 = sshll.u32 %s1547_s9, 4  ;;  %s963_s16 = int_to_ptr.hbm [resolvable:$true] %s962_s16 }
 0x435   : > { %s1191_s17 = smov [#allocation10]  }
 0x436   : > { %s960_s18 = sshll.u32 %s1191_s17, 4  ;;  %s961_s18 = int_to_ptr.vmem [resolvable:$true] %s960_s18 }
 0x437   : > { %1075 = dma.vmem_to_hbm [thread:$0]  (%p1078_p9), %s961_s18, 64, %s963_s16, [#allocation11]  }
 0x438   : > { %1172 = dma.done.wait (%p1078_p9), [#allocation11], 64  }
 0x439   : > { %1174 = vsyncadd (%p1078_p9), [#allocation11], 4294967232 }
 0x43a PF: > { %s20_s11 = sadd.s32 1, %s1185_s11   ;;  %s1556_s30 = smov %s1181_s10 }
 0x43b   : > { %p17_p10 = scmp.ge.s32.totalorder %s20_s11, 5   ;;  %s1557_s10 = smov %s1559_s13 }
 0x43d   :  { %19 = sbr.rel (!%p17_p10) target bundleno = 2 (0x2), region = 112 }
 0x442   :  { %976 = vsyncpa [#allocation11], 1 }
 0x443   :  { %978 = vsyncpa [#allocation11 + $0x1], 1 }

</bundles_post_ra>
